<compile_context>
chip_gen: v5e
topology: v5e:2x2
jax: 0.10.0
libtpu: 0.0.40
codegen_flags: <defaults>
</compile_context>

<pallas_src>
import jax
import jax.numpy as jnp
from jax.experimental import pallas as pl
from jax.experimental.pallas import tpu as pltpu

_HP = 128  # hidden width (64) zero-padded to the full 128-lane width


def _round_up(x, m):
    return ((x + m - 1) // m) * m


def policy_kernel(x_ref, w1_ref, b1_ref, w2_ref, b2_ref, w3_ref, b3_ref,
                  mean_ref):
    """One batch tile: x (TB, D_in) -> mean (TB, A). f32 accumulation."""
    x = x_ref[...]
    h1 = jnp.dot(x, w1_ref[...], preferred_element_type=jnp.float32) + b1_ref[...]
    h1 = jnp.maximum(h1, 0.0).astype(w2_ref.dtype)
    h2 = jnp.dot(h1, w2_ref[...], preferred_element_type=jnp.float32) + b2_ref[...]
    h2 = jnp.maximum(h2, 0.0).astype(w3_ref.dtype)
    mean = jnp.dot(h2, w3_ref[...], preferred_element_type=jnp.float32) + b3_ref[...]
    mean_ref[...] = mean.astype(mean_ref.dtype)   # narrow (TB, A) store


def prepare_params(params, compute_dtype=jnp.bfloat16):
    """One-time (per parameter update) padding / casting of the weights.

    Hoisted out of the forward path so the scatter-into-zeros and dtype casts
    do not run as separate XLA kernels on every policy evaluation.
    """
    w1, b1, w2, b2, w3, b3, log_std = params
    d_in, h = w1.shape
    a = w3.shape[1]

    w1p = jnp.zeros((d_in, _HP), jnp.float32).at[:, :h].set(w1).astype(compute_dtype)
    b1p = jnp.zeros((1, _HP), jnp.float32).at[:, :h].set(b1.reshape(1, -1))
    w2p = jnp.zeros((_HP, _HP), jnp.float32).at[:h, :h].set(w2).astype(compute_dtype)
    b2p = jnp.zeros((1, _HP), jnp.float32).at[:, :h].set(b2.reshape(1, -1))
    w3p = jnp.zeros((_HP, a), jnp.float32).at[:h, :].set(w3).astype(compute_dtype)
    b3p = b3.reshape(1, a).astype(jnp.float32)

    return {
        "w1": w1p, "b1": b1p, "w2": w2p, "b2": b2p, "w3": w3p, "b3": b3p,
        "std": jnp.exp(log_std).reshape(a),        # state-independent
        "raw": (w1, b1, w2, b2, w3, b3),           # for the exact f32 fast path
        "input_dim": d_in, "action_dim": a, "compute_dtype": compute_dtype,
    }


def policy_forward(state, prepared, *, block_rows=4096, use_pallas=None):
    """state: (B, input_dim) f32.  Returns (mean (B, A) f32, std (A,) f32)."""
    B, d_in = state.shape
    assert d_in == prepared["input_dim"]
    a = prepared["action_dim"]
    std = prepared["std"]

    if use_pallas is None:
        use_pallas = B >= 1024          # small (rollout-size) batches: plain JAX

    if not use_pallas:
        w1, b1, w2, b2, w3, b3 = prepared["raw"]
        h1 = jnp.maximum(state @ w1 + b1, 0.0)
        h2 = jnp.maximum(h1 @ w2 + b2, 0.0)
        return h2 @ w3 + b3, std

    cdt = prepared["compute_dtype"]

    # Batch tiling: 16-aligned tiles (bf16 sublane packing); for big batches
    # cap TB so the grid has >= 2 steps (v7x megacore via "parallel" axis).
    B_aligned = _round_up(B, 16)
    TB = _round_up(min(block_rows, B_aligned), 16)
    if B_aligned >= 4096 and TB >= B_aligned:
        TB = _round_up(pl.cdiv(B_aligned, 2), 16)
    B_pad = pl.cdiv(B, TB) * TB

    x = state.astype(cdt)
    if B_pad != B:
        x = jnp.pad(x, ((0, B_pad - B), (0, 0)))

    const = lambda i: (0, 0)            # weights stay VMEM-resident across grid
    mean_padded = pl.pallas_call(
        policy_kernel,
        out_shape=jax.ShapeDtypeStruct((B_pad, a), jnp.float32),
        grid=(B_pad // TB,),
        in_specs=[
            pl.BlockSpec((TB, d_in), lambda i: (i, 0)),   # streamed states
            pl.BlockSpec((d_in, _HP), const),
            pl.BlockSpec((1, _HP), const),
            pl.BlockSpec((_HP, _HP), const),
            pl.BlockSpec((1, _HP), const),
            pl.BlockSpec((_HP, a), const),
            pl.BlockSpec((1, a), const),
        ],
        out_specs=pl.BlockSpec((TB, a), lambda i: (i, 0)),  # narrow output
        compiler_params=pltpu.CompilerParams(
            dimension_semantics=("parallel",),
            vmem_limit_bytes=48 * 1024 * 1024,
        ),
    )(x, prepared["w1"], prepared["b1"], prepared["w2"], prepared["b2"],
      prepared["w3"], prepared["b3"])

    mean = mean_padded if B_pad == B else mean_padded[:B]
    return mean, std


def init_params(key, input_dim, action_dim, hidden=64):
    """Deterministic init mimicking PyTorch nn.Linear default U(-1/sqrt(fan_in), +)."""
    def linear(k, fan_in, fan_out):
        kw, kb = jax.random.split(k)
        bound = 1.0 / jnp.sqrt(fan_in)
        w = jax.random.uniform(kw, (fan_in, fan_out), jnp.float32, -bound, bound)
        b = jax.random.uniform(kb, (fan_out,), jnp.float32, -bound, bound)
        return w, b

    k1, k2, k3 = jax.random.split(key, 3)
    w1, b1 = linear(k1, input_dim, hidden)
    w2, b2 = linear(k2, hidden, hidden)
    w3, b3 = linear(k3, hidden, action_dim)
    log_std = jnp.zeros((action_dim,), jnp.float32)  # nn.Parameter(torch.zeros(A))
    return (w1, b1, w2, b2, w3, b3, log_std)


if __name__ == "__main__":
    key = jax.random.PRNGKey(0)
    k_state, k_state2, k_params = jax.random.split(key, 3)

    input_dim, action_dim = 16, 4
    params = init_params(k_params, input_dim, action_dim)
    prepared = prepare_params(params)

    def reference(state):
        w1, b1, w2, b2, w3, b3, log_std = params
        h1 = jnp.maximum(state @ w1 + b1, 0.0)
        h2 = jnp.maximum(h1 @ w2 + b2, 0.0)
        return h2 @ w3 + b3, jnp.exp(log_std)

    # 1) Small rollout batch, forced through the Pallas kernel (grid=1, row padding).
    state_small = jax.random.normal(k_state, (8, input_dim), jnp.float32)
    mean_s, std_s = policy_forward(state_small, prepared, use_pallas=True)
    jax.block_until_ready((mean_s, std_s))

    # 2) Larger batch with several grid steps (streaming / pipelined path).
    state_big = jax.random.normal(k_state2, (300, input_dim), jnp.float32)
    mean_b, std_b = policy_forward(state_big, prepared, block_rows=128,
                                   use_pallas=True)
    jax.block_until_ready((mean_b, std_b))

    # 3) Default dispatch: small batches take the plain-JAX f32 fast path.
    mean_fast, _ = policy_forward(state_small, prepared)
    jax.block_until_ready(mean_fast)

    for mean, std, st in ((mean_s, std_s, state_small), (mean_b, std_b, state_big)):
        mean_ref, std_ref = reference(st)
        assert mean.shape == mean_ref.shape and std.shape == (action_dim,)
        # Kernel uses bf16 matmul operands -> loose tolerance on the mean.
        assert jnp.allclose(mean, mean_ref, atol=2e-2, rtol=2e-2), "mean mismatch"
        assert jnp.allclose(std, std_ref, atol=1e-6), "std mismatch"

    mean_ref_small, _ = reference(state_small)
    assert jnp.allclose(mean_fast, mean_ref_small, atol=1e-5, rtol=1e-5), \
        "fast-path mean mismatch"

    print("KERNEL_OK")
</pallas_src>

<mosaic_0001>
module attributes {stable_mosaic.version = 11 : i64} {
  func.func @policy_kernel(%arg0: i32, %arg1: memref<16x16xbf16, #tpu.memory_space<vmem>>, %arg2: memref<16x128xbf16, #tpu.memory_space<vmem>>, %arg3: memref<1x128xf32, #tpu.memory_space<vmem>>, %arg4: memref<128x128xbf16, #tpu.memory_space<vmem>>, %arg5: memref<1x128xf32, #tpu.memory_space<vmem>>, %arg6: memref<128x4xbf16, #tpu.memory_space<vmem>>, %arg7: memref<1x4xf32, #tpu.memory_space<vmem>>, %arg8: memref<16x4xf32, #tpu.memory_space<vmem>>) attributes {dimension_semantics = [#tpu.dimension_semantics<parallel>], iteration_bounds = array<i64: 1>, scalar_prefetch = 0 : i64, scratch_operands = 0 : i64, tpu.core_type = #tpu.core_type<tc>, window_params = [{transform_indices = @transform_0, window_bounds = array<i64: 16, 16>}, {pipeline_mode = #tpu.pipeline_mode<synchronous>, transform_indices = @transform_1, window_bounds = array<i64: 16, 128>}, {pipeline_mode = #tpu.pipeline_mode<synchronous>, transform_indices = @transform_2, window_bounds = array<i64: 1, 128>}, {pipeline_mode = #tpu.pipeline_mode<synchronous>, transform_indices = @transform_3, window_bounds = array<i64: 128, 128>}, {pipeline_mode = #tpu.pipeline_mode<synchronous>, transform_indices = @transform_4, window_bounds = array<i64: 1, 128>}, {pipeline_mode = #tpu.pipeline_mode<synchronous>, transform_indices = @transform_5, window_bounds = array<i64: 128, 4>}, {pipeline_mode = #tpu.pipeline_mode<synchronous>, transform_indices = @transform_6, window_bounds = array<i64: 1, 4>}, {transform_indices = @transform_7, window_bounds = array<i64: 16, 4>}]} {
    %c0 = arith.constant 0 : index
    %c0_0 = arith.constant 0 : index
    %0 = vector.load %arg1[%c0, %c0_0] : memref<16x16xbf16, #tpu.memory_space<vmem>>, vector<16x16xbf16>
    %c0_1 = arith.constant 0 : index
    %c0_2 = arith.constant 0 : index
    %1 = vector.load %arg2[%c0_1, %c0_2] : memref<16x128xbf16, #tpu.memory_space<vmem>>, vector<16x128xbf16>
    %cst = arith.constant dense<0.000000e+00> : vector<16x128xf32>
    %2 = tpu.matmul %0, %1, %cst {dimension_numbers = #tpu.dot_dimension_numbers<[1], [0], [0], [1], [0, 0, 1, 1], [], []>} : vector<16x16xbf16>, vector<16x128xbf16>, vector<16x128xf32> -> vector<16x128xf32>
    %c0_3 = arith.constant 0 : index
    %c0_4 = arith.constant 0 : index
    %3 = vector.load %arg3[%c0_3, %c0_4] : memref<1x128xf32, #tpu.memory_space<vmem>>, vector<1x128xf32>
    %4 = vector.broadcast %3 : vector<1x128xf32> to vector<16x128xf32>
    %5 = arith.addf %2, %4 : vector<16x128xf32>
    %cst_5 = arith.constant 0.000000e+00 : f32
    %6 = vector.broadcast %cst_5 : f32 to vector<16x128xf32>
    %7 = arith.maximumf %5, %6 : vector<16x128xf32>
    %8 = arith.truncf %7 : vector<16x128xf32> to vector<16x128xbf16>
    %c0_6 = arith.constant 0 : index
    %c0_7 = arith.constant 0 : index
    %9 = vector.load %arg4[%c0_6, %c0_7] : memref<128x128xbf16, #tpu.memory_space<vmem>>, vector<128x128xbf16>
    %cst_8 = arith.constant dense<0.000000e+00> : vector<16x128xf32>
    %10 = tpu.matmul %8, %9, %cst_8 {dimension_numbers = #tpu.dot_dimension_numbers<[1], [0], [0], [1], [0, 0, 1, 1], [], []>} : vector<16x128xbf16>, vector<128x128xbf16>, vector<16x128xf32> -> vector<16x128xf32>
    %c0_9 = arith.constant 0 : index
    %c0_10 = arith.constant 0 : index
    %11 = vector.load %arg5[%c0_9, %c0_10] : memref<1x128xf32, #tpu.memory_space<vmem>>, vector<1x128xf32>
    %12 = vector.broadcast %11 : vector<1x128xf32> to vector<16x128xf32>
    %13 = arith.addf %10, %12 : vector<16x128xf32>
    %cst_11 = arith.constant 0.000000e+00 : f32
    %14 = vector.broadcast %cst_11 : f32 to vector<16x128xf32>
    %15 = arith.maximumf %13, %14 : vector<16x128xf32>
    %16 = arith.truncf %15 : vector<16x128xf32> to vector<16x128xbf16>
    %c0_12 = arith.constant 0 : index
    %c0_13 = arith.constant 0 : index
    %17 = vector.load %arg6[%c0_12, %c0_13] : memref<128x4xbf16, #tpu.memory_space<vmem>>, vector<128x4xbf16>
    %cst_14 = arith.constant dense<0.000000e+00> : vector<16x4xf32>
    %18 = tpu.matmul %16, %17, %cst_14 {dimension_numbers = #tpu.dot_dimension_numbers<[1], [0], [0], [1], [0, 0, 1, 1], [], []>} : vector<16x128xbf16>, vector<128x4xbf16>, vector<16x4xf32> -> vector<16x4xf32>
    %c0_15 = arith.constant 0 : index
    %c0_16 = arith.constant 0 : index
    %19 = vector.load %arg7[%c0_15, %c0_16] : memref<1x4xf32, #tpu.memory_space<vmem>>, vector<1x4xf32>
    %20 = vector.broadcast %19 : vector<1x4xf32> to vector<16x4xf32>
    %21 = arith.addf %18, %20 : vector<16x4xf32>
    %c0_17 = arith.constant 0 : index
    %c0_18 = arith.constant 0 : index
    %22 = vector.load %arg8[%c0_17, %c0_18] : memref<16x4xf32, #tpu.memory_space<vmem>>, vector<16x4xf32>
    tpu.vector_store %arg8[%c0_17, %c0_18], %21 {strides = array<i32>} : memref<16x4xf32, #tpu.memory_space<vmem>>, vector<16x4xf32>,
    return
  }
  func.func @transform_0(%arg0: i32) -> (i32, i32) {
    %c0_i32 = arith.constant 0 : i32
    %c0_i32_0 = arith.constant 0 : i32
    return %arg0, %c0_i32 : i32, i32
  }
  func.func @transform_1(%arg0: i32) -> (i32, i32) {
    %c0_i32 = arith.constant 0 : i32
    %c0_i32_0 = arith.constant 0 : i32
    %c0_i32_1 = arith.constant 0 : i32
    return %c0_i32, %c0_i32_0 : i32, i32
  }
  func.func @transform_2(%arg0: i32) -> (i32, i32) {
    %c0_i32 = arith.constant 0 : i32
    %c0_i32_0 = arith.constant 0 : i32
    %c0_i32_1 = arith.constant 0 : i32
    return %c0_i32, %c0_i32_0 : i32, i32
  }
  func.func @transform_3(%arg0: i32) -> (i32, i32) {
    %c0_i32 = arith.constant 0 : i32
    %c0_i32_0 = arith.constant 0 : i32
    %c0_i32_1 = arith.constant 0 : i32
    return %c0_i32, %c0_i32_0 : i32, i32
  }
  func.func @transform_4(%arg0: i32) -> (i32, i32) {
    %c0_i32 = arith.constant 0 : i32
    %c0_i32_0 = arith.constant 0 : i32
    %c0_i32_1 = arith.constant 0 : i32
    return %c0_i32, %c0_i32_0 : i32, i32
  }
  func.func @transform_5(%arg0: i32) -> (i32, i32) {
    %c0_i32 = arith.constant 0 : i32
    %c0_i32_0 = arith.constant 0 : i32
    %c0_i32_1 = arith.constant 0 : i32
    return %c0_i32, %c0_i32_0 : i32, i32
  }
  func.func @transform_6(%arg0: i32) -> (i32, i32) {
    %c0_i32 = arith.constant 0 : i32
    %c0_i32_0 = arith.constant 0 : i32
    %c0_i32_1 = arith.constant 0 : i32
    return %c0_i32, %c0_i32_0 : i32, i32
  }
  func.func @transform_7(%arg0: i32) -> (i32, i32) {
    %c0_i32 = arith.constant 0 : i32
    %c0_i32_0 = arith.constant 0 : i32
    return %arg0, %c0_i32 : i32, i32
  }
}

</mosaic_0001>

<bundles_post_ra>
// kernel: tpu_custom_call.1
= control target key start
LH: loop header
LB: loop body
LE: loop exit
PB: predicated region body
PF: predicated region fallthrough
CT: control target
= control target key end

     0   :  { %12 = vsyncpa [#allocation3], 0  ;;  %s538_s0 = inlined_call_operand.hbm [shape: bf16[16,16], index: 0, kind: input, shape index: {}]   ;;  %s539_s1 = inlined_call_operand.hbm [shape: bf16[16,128], index: 1, kind: input, shape index: {}]   ;;  %s540_s2 = inlined_call_operand.vmem [shape: f32[1,128], index: 2, kind: input, shape index: {}]   ;;  %s541_s3 = inlined_call_operand.vmem [shape: bf16[128,128], index: 3, kind: input, shape index: {}]   ;;  %s542_s4 = inlined_call_operand.vmem [shape: f32[1,128], index: 4, kind: input, shape index: {}]   ;;  %s543_s5 = inlined_call_operand.vmem [shape: bf16[128,4], index: 5, kind: input, shape index: {}]   ;;  %s544_s6 = inlined_call_operand.vmem [shape: f32[1,4], index: 6, kind: input, shape index: {}]   ;;  %s545_s7 = inlined_call_operand.vmem [shape: f32[16,4], index: 7, kind: output, shape index: {}]  }
   0x1   :  { %s18_s26 = sshll.u32 %s538_s0, 4  ;;  %s19_s26 = int_to_ptr.hbm [resolvable:$true] %s18_s26 }
   0x2   :  { %13 = vsyncpa [#allocation5], 0  ;;  %s425_s27 = smov [#allocation2]   ;;  %s31_s8 = sshll.u32 %s539_s1, 4  ;;  %s32_s8 = int_to_ptr.hbm [resolvable:$true] %s31_s8 }
   0x3   :  { %s20_s28 = sshll.u32 %s425_s27, 4  ;;  %s426_s9 = smov 64   ;;  %s21_s28 = int_to_ptr.vmem [resolvable:$true] %s20_s28 }
   0x4   :  { %s427_s10 = smov 4   ;;  %s428_s11 = smov [#allocation4]  }
   0x5   :  { %26 = dma.hbm_to_vmem [thread:$0]  %s19_s26, 128, %s21_s28, [#allocation3], %s426_s9, %s426_s9, %s427_s10  }
   0x6   :  { %s33_s12 = sshll.u32 %s428_s11, 4  ;;  %s34_s12 = int_to_ptr.vmem [resolvable:$true] %s33_s12 }
   0x7   :  { %39 = dma.hbm_to_vmem [thread:$0]  %s32_s8, 128, %s34_s12, [#allocation5], %s426_s9, %s426_s9, %s427_s10  }
   0x8   :  { %421 = dma.done.wait [#allocation3], 128  }
   0x9   :  { %422 = vsyncadd [#allocation3], 4294967168 }
   0xa   :  { %423 = dma.done.wait [#allocation5], 128  }
   0xb   :  { %424 = vsyncadd [#allocation5], 4294967168  ;;  %v349_v0 = vld [vmem:[#allocation4] sm:$0xff]  ;;  %v357_v1 = vld [vmem:[%s541_s3 + $0x38] sm:$0xff]  ;;  %vm78_vm0 = vcmask 130048   ;;  %vm266_vm1 = vcmask 31744  }
   0xc   :  { %v348_v2 = vld [vmem:[#allocation2] sm:$0xff]  ;;  %89 = vmatpush.bf16.msra.mxu0 %v349_v0  ;;  %167 = vmatpush.bf16.msra.mxu1 %v357_v1  ;;  %v356_v3 = vld [vmem:[%s541_s3 + $0x30] sm:$0xff]  ;;  %v355_v4 = vld [vmem:[%s541_s3 + $0x28] sm:$0xff] }
   0xd   :  { %v354_v5 = vld [vmem:[%s541_s3 + $0x20] sm:$0xff]  ;;  %v353_v6 = vld [vmem:[%s541_s3 + $0x18] sm:$0xff]  ;;  %v352_v7 = vld [vmem:[%s541_s3 + $0x10] sm:$0xff] }
   0xe   :  { %v351_v8 = vld [vmem:[%s541_s3 + $0x8] sm:$0xff]  ;;  %v350_v9 = vld [vmem:[%s541_s3] sm:$0xff]  ;;  %v365_v10 = vld [vmem:[%s543_s5 + $0x38] sm:$0xff] }
   0xf   :  { %283 = vmatmul.msk.bf16.vlgmr.msra.gmra.mxu0 %vm78_vm0, %v348_v2  ;;  %252 = vmatpush.bf16.msra.mxu2 %v365_v10  ;;  %v364_v11 = vld [vmem:[%s543_s5 + $0x30] sm:$0xff]  ;;  %v363_v12 = vld [vmem:[%s543_s5 + $0x28] sm:$0xff]  ;;  %v362_v13 = vld [vmem:[%s543_s5 + $0x20] sm:$0xff] }
  0x10   :  { %168 = vmatpush.bf16.msra.mxu1 %v356_v3  ;;  %v370_v15 = vld [vmem:[%s540_s2] ss:$0 sm:$0xff]  ;;  %v361_v22 = vld [vmem:[%s543_s5 + $0x18] sm:$0xff]  ;;  %v360_v23 = vld [vmem:[%s543_s5 + $0x10] sm:$0xff] }
  0x11   :  { %v359_v24 = vld [vmem:[%s543_s5 + $0x8] sm:$0xff]  ;;  %v358_v25 = vld [vmem:[%s543_s5] sm:$0xff] }
  0x12   :  { %v371_v27 = vld [vmem:[%s542_s4] ss:$0 sm:$0xff] }
  0x13   :  { %253 = vmatpush.bf16.msra.mxu2 %v364_v11  ;;  %v372_v34 = vld [vmem:[%s544_s6] ss:$0 sm:$0xff] }
  0x14   :  { %169 = vmatpush.bf16.msra.mxu1 %v355_v4 }
  0x17   :  { %254 = vmatpush.bf16.msra.mxu2 %v363_v12 }
  0x18   :  { %170 = vmatpush.bf16.msra.mxu1 %v354_v5 }
  0x1b   :  { %255 = vmatpush.bf16.msra.mxu2 %v362_v13 }
  0x1c   :  { %171 = vmatpush.bf16.msra.mxu1 %v353_v6 }
  0x1f   :  { %256 = vmatpush.bf16.msra.mxu2 %v361_v22 }
  0x20   :  { %172 = vmatpush.bf16.msra.mxu1 %v352_v7 }
  0x23   :  { %257 = vmatpush.bf16.msra.mxu2 %v360_v23 }
  0x24   :  { %173 = vmatpush.bf16.msra.mxu1 %v351_v8 }
  0x27   :  { %258 = vmatpush.bf16.msra.mxu2 %v359_v24 }
  0x28   :  { %174 = vmatpush.bf16.msra.mxu1 %v350_v9 }
  0x2b   :  { %259 = vmatpush.bf16.msra.mxu2 %v358_v25 }
  0x8c   :  { %v91_v14 = vpop.f32.mrf.mxu0 }
  0x8d   :  { %v92_v16 = vadd.f32 %v370_v15, %v91_v14 }
  0x8f   :  { %v96_v19 = vmax.f32 %v92_v16, 0.0 }
  0x94   :  { %v93_v17 = vpop.f32.mrf.mxu0 }
  0x95   :  { %v94_v18 = vadd.f32 %v370_v15, %v93_v17 }
  0x97   :  { %v97_v20 = vmax.f32 %v94_v18, 0.0 }
  0x99   :  { %v98_v21 = vpack.c.bf16 %v97_v20, %v96_v19 }
  0x9b   :  { %175 = vmatmul.bf16.vlgmr.msra.gmra.mxu1 %v98_v21 }
 0x118   :  { %v176_v26 = vpop.f32.mrf.mxu1 }
 0x119   :  { %v177_v28 = vadd.f32 %v371_v27, %v176_v26 }
 0x11b   :  { %v181_v31 = vmax.f32 %v177_v28, 0.0 }
 0x120   :  { %v178_v29 = vpop.f32.mrf.mxu1 }
 0x121   :  { %v179_v30 = vadd.f32 %v371_v27, %v178_v29 }
 0x123   :  { %v182_v32 = vmax.f32 %v179_v30, 0.0 }
 0x125   :  { %v183_v33 = vpack.c.bf16 %v182_v32, %v181_v31 }
 0x127   :  { %260 = vmatmul.bf16.vlgmr.msra.gmra.mxu2 %v183_v33 }
 0x1aa   :  { %v261_v35 = vpop.f32.mrf.mxu2 }
 0x1ab   :  { %v262_v36 = vadd.f32 %v372_v34, %v261_v35 }
 0x1ad   :  { %267 = vst.msk [vmem:[%s545_s7] sm:$0xff] %vm266_vm1, %v262_v36 }
 0x1b2   :  { %v263_v37 = vpop.f32.mrf.mxu2 }
 0x1b3   :  { %v264_v38 = vadd.f32 %v372_v34, %v263_v37 }
 0x1b5   :  { %268 = vst.msk [vmem:[%s545_s7 + $0x8] sm:$0xff] %vm266_vm1, %v264_v38 }
 0x1b6   :  { %273 = vsyncpa [#allocation3], 1 }
 0x1b7   :  { %274 = vsyncpa [#allocation5], 1 }

</bundles_post_ra>
